<compile_context>
chip_gen: v6e
topology: v6e:2x2x1
jax: 0.10.0
libtpu: 0.0.40
codegen_flags: <defaults>
</compile_context>

<pallas_src>
import functools

import jax
import jax.numpy as jnp
from jax import lax
from jax.experimental import pallas as pl
from jax.experimental.pallas import tpu as pltpu

ONE_HOT_MAX_VOCAB = 2048     # above this, one-hot FLOPs stop being worth it
TARGET_BLOCK_TOKENS = 256    # target tokens gathered per grid step
VMEM_LIMIT_CAP = 64 << 20    # v7x physical VMEM per TC


def _round_up(x, m):
    return (x + m - 1) // m * m


def _sublane_multiple(dtype):
    # minimum second-to-last tile dim: 8 (4-byte), 16 (2-byte), 32 (1-byte)
    return {4: 8, 2: 16, 1: 32}.get(jnp.dtype(dtype).itemsize, 8)


def _compiler_params(vmem_need_bytes):
    limit = int(min(max(vmem_need_bytes, 32 << 20), VMEM_LIMIT_CAP))
    return pltpu.CompilerParams(
        dimension_semantics=("parallel",),   # output blocks are independent
        vmem_limit_bytes=limit,
    )


# --------------------------------------------------------------- one-hot path

def _embed_onehot_kernel(ids_ref, table_ref, out_ref):
    # ids_ref:   VMEM (t_blk, 1) int32   -- this block's token ids
    # table_ref: VMEM (vocab, d_model)   -- resident (block index constant)
    # out_ref:   VMEM (t_blk, d_model)   -- dense, lane-aligned tile store
    t_blk = out_ref.shape[0]
    vocab = table_ref.shape[0]
    ids = ids_ref[...]                                           # (t_blk, 1)
    iota = lax.broadcasted_iota(jnp.int32, (t_blk, vocab), 1)    # (t_blk, vocab)
    # out-of-range ids match nothing -> zero row; no OOB access possible
    onehot = (iota == ids).astype(table_ref.dtype)
    out_ref[...] = jnp.dot(
        onehot, table_ref[...], preferred_element_type=jnp.float32
    ).astype(out_ref.dtype)


def _embed_onehot(flat_ids, table, t_blk):
    padded_tokens = flat_ids.shape[0]
    vocab, d_model = table.shape
    itemsize = jnp.dtype(table.dtype).itemsize
    vmem_need = (
        2 * vocab * d_model * itemsize       # table (double-buffer allocation)
        + 2 * t_blk * d_model * itemsize     # output tiles
        + 2 * t_blk * 4                      # id tiles
        + 2 * t_blk * vocab * 4              # one-hot + iota intermediates
        + (4 << 20)                          # headroom
    )
    ids_2d = flat_ids.reshape(padded_tokens, 1)
    return pl.pallas_call(
        _embed_onehot_kernel,
        out_shape=jax.ShapeDtypeStruct((padded_tokens, d_model), table.dtype),
        grid=(padded_tokens // t_blk,),
        in_specs=[
            pl.BlockSpec((t_blk, 1), lambda i: (i, 0)),
            pl.BlockSpec((vocab, d_model), lambda i: (0, 0)),  # fetched once
        ],
        out_specs=pl.BlockSpec((t_blk, d_model), lambda i: (i, 0)),
        compiler_params=_compiler_params(vmem_need),
    )(ids_2d, table)


# ----------------------------------------------------------- gather-loop path

def _embed_gather_kernel(ids_ref, table_ref, out_ref, *, t_blk, unroll):
    # ids_ref:   SMEM (padded_tokens,) int32 -- scalar-prefetched token ids
    # table_ref: VMEM (vocab, d_model)       -- resident across grid steps
    # out_ref:   VMEM (t_blk, d_model)
    vocab = table_ref.shape[0]
    base = pl.program_id(0) * t_blk

    def body(t, carry):
        # scalar clamp (free on the scalar unit); keeps reads inside the table
        tok = jnp.clip(ids_ref[base + t], 0, vocab - 1)
        out_ref[t, :] = table_ref[tok, :]
        return carry

    lax.fori_loop(0, t_blk, body, 0, unroll=unroll)


def _embed_gather(flat_ids, table, t_blk):
    # NOTE: the whole (padded_tokens,) id vector sits in SMEM here; for very
    # long sequences prefer the one-hot path or per-block SMEM ids.
    padded_tokens = flat_ids.shape[0]
    vocab, d_model = table.shape
    itemsize = jnp.dtype(table.dtype).itemsize
    vmem_need = (
        2 * vocab * d_model * itemsize
        + 2 * t_blk * d_model * itemsize
        + (4 << 20)
    )
    kernel = functools.partial(
        _embed_gather_kernel, t_blk=t_blk, unroll=min(8, t_blk)
    )
    return pl.pallas_call(
        kernel,
        out_shape=jax.ShapeDtypeStruct((padded_tokens, d_model), table.dtype),
        grid_spec=pltpu.PrefetchScalarGridSpec(
            num_scalar_prefetch=1,                     # flat ids -> SMEM
            grid=(padded_tokens // t_blk,),
            in_specs=[
                pl.BlockSpec((vocab, d_model), lambda i, ids: (0, 0)),
            ],
            out_specs=pl.BlockSpec((t_blk, d_model), lambda i, ids: (i, 0)),
        ),
        compiler_params=_compiler_params(vmem_need),
    )(flat_ids, table)


# -------------------------------------------------------------------- wrapper

def embedder_forward(ids, table, *, block_tokens=TARGET_BLOCK_TOKENS,
                     use_onehot=None):
    """ids: (batch, seq) integer tokens; table: (vocab, d_model) weights.
    Returns (batch, seq, d_model) = table[ids]."""
    batch, seq = ids.shape
    vocab, d_model = table.shape

    flat_ids = ids.reshape(-1).astype(jnp.int32)
    num_tokens = flat_ids.shape[0]

    sub = _sublane_multiple(table.dtype)
    t_blk = min(_round_up(block_tokens, sub), _round_up(num_tokens, sub))
    padded_tokens = _round_up(num_tokens, t_blk)
    if padded_tokens != num_tokens:
        # padded slots gather row 0; they are sliced off below
        flat_ids = jnp.pad(flat_ids, (0, padded_tokens - num_tokens))

    if use_onehot is None:
        use_onehot = vocab <= ONE_HOT_MAX_VOCAB

    if use_onehot:
        out_flat = _embed_onehot(flat_ids, table, t_blk)
    else:
        out_flat = _embed_gather(flat_ids, table, t_blk)

    return out_flat[:num_tokens].reshape(batch, seq, d_model)


if __name__ == "__main__":
    vocab_size = 64
    d_model = 128
    batch, seq = 2, 8

    key = jax.random.PRNGKey(0)
    k_tab, k_ids = jax.random.split(key)

    # nn.Embedding default init: weight ~ N(0, 1)
    embed_weight = jax.random.normal(k_tab, (vocab_size, d_model),
                                     dtype=jnp.float32)
    x = jax.random.randint(k_ids, (batch, seq), 0, vocab_size, dtype=jnp.int32)

    # reference: plain gather
    ref = jnp.take(embed_weight, x.reshape(-1), axis=0).reshape(
        batch, seq, d_model)

    # default path (one-hot MXU gather; vocab is small)
    out = jax.block_until_ready(embedder_forward(x, embed_weight))
    assert out.shape == (batch, seq, d_model)
    assert jnp.allclose(out, ref), "one-hot path mismatch vs reference gather"

    # fallback path (scalar-prefetched row gather), exercised for coverage
    out2 = jax.block_until_ready(
        embedder_forward(x, embed_weight, use_onehot=False))
    assert jnp.allclose(out2, ref), "gather path mismatch vs reference gather"

    print("KERNEL_OK")
</pallas_src>

<mosaic_0001>
module attributes {stable_mosaic.version = 11 : i64} {
  func.func @_embed_onehot_kernel(%arg0: i32, %arg1: memref<16x1xi32, #tpu.memory_space<vmem>>, %arg2: memref<64x128xf32, #tpu.memory_space<vmem>>, %arg3: memref<16x128xf32, #tpu.memory_space<vmem>>) attributes {dimension_semantics = [#tpu.dimension_semantics<parallel>], iteration_bounds = array<i64: 1>, scalar_prefetch = 0 : i64, scratch_operands = 0 : i64, tpu.core_type = #tpu.core_type<tc>, window_params = [{transform_indices = @transform_0, window_bounds = array<i64: 16, 1>}, {pipeline_mode = #tpu.pipeline_mode<synchronous>, transform_indices = @transform_1, window_bounds = array<i64: 64, 128>}, {transform_indices = @transform_2, window_bounds = array<i64: 16, 128>}]} {
    %c0 = arith.constant 0 : index
    %c0_0 = arith.constant 0 : index
    %0 = vector.load %arg1[%c0, %c0_0] : memref<16x1xi32, #tpu.memory_space<vmem>>, vector<16x1xi32>
    %1 = tpu.iota {dimensions = array<i32: 1>} : vector<16x64xi32>
    %2 = vector.broadcast %0 : vector<16x1xi32> to vector<16x64xi32>
    %3 = arith.cmpi eq, %1, %2 : vector<16x64xi32>
    %4 = arith.extui %3 : vector<16x64xi1> to vector<16x64xi32>
    %5 = arith.sitofp %4 : vector<16x64xi32> to vector<16x64xf32>
    %c0_1 = arith.constant 0 : index
    %c0_2 = arith.constant 0 : index
    %6 = vector.load %arg2[%c0_1, %c0_2] : memref<64x128xf32, #tpu.memory_space<vmem>>, vector<64x128xf32>
    %cst = arith.constant dense<0.000000e+00> : vector<16x128xf32>
    %7 = tpu.matmul %5, %6, %cst {dimension_numbers = #tpu.dot_dimension_numbers<[1], [0], [0], [1], [0, 0, 1, 1], [], []>} : vector<16x64xf32>, vector<64x128xf32>, vector<16x128xf32> -> vector<16x128xf32>
    %c0_3 = arith.constant 0 : index
    %c0_4 = arith.constant 0 : index
    %8 = vector.load %arg3[%c0_3, %c0_4] : memref<16x128xf32, #tpu.memory_space<vmem>>, vector<16x128xf32>
    tpu.vector_store %arg3[%c0_3, %c0_4], %7 {strides = array<i32>} : memref<16x128xf32, #tpu.memory_space<vmem>>, vector<16x128xf32>,
    return
  }
  func.func @transform_0(%arg0: i32) -> (i32, i32) {
    %c0_i32 = arith.constant 0 : i32
    %c0_i32_0 = arith.constant 0 : i32
    return %arg0, %c0_i32 : i32, i32
  }
  func.func @transform_1(%arg0: i32) -> (i32, i32) {
    %c0_i32 = arith.constant 0 : i32
    %c0_i32_0 = arith.constant 0 : i32
    %c0_i32_1 = arith.constant 0 : i32
    return %c0_i32, %c0_i32_0 : i32, i32
  }
  func.func @transform_2(%arg0: i32) -> (i32, i32) {
    %c0_i32 = arith.constant 0 : i32
    %c0_i32_0 = arith.constant 0 : i32
    return %arg0, %c0_i32 : i32, i32
  }
}

</mosaic_0001>

<bundles_post_ra>
// kernel: tpu_custom_call.1
= control target key start
LH: loop header
LB: loop body
LE: loop exit
PB: predicated region body
PF: predicated region fallthrough
CT: control target
= control target key end

     0   :  { %7 = vsyncpa [#allocation3], 0  ;;  %s274_s0 = inlined_call_operand.vmem [shape: s32[16,1], index: 0, kind: input, shape index: {}]   ;;  %s275_s1 = inlined_call_operand.hbm [shape: f32[64,128], index: 1, kind: input, shape index: {}]   ;;  %s276_s2 = inlined_call_operand.hbm [shape: f32[16,128], index: 2, kind: output, shape index: {}]  }
   0x1   :  { %8 = vsyncpa [#allocation4], 0  ;;  %s235_s9 = smov [#allocation2]  }
   0x2   :  { %s16_s10 = sshll.u32 %s235_s9, 4  ;;  %s17_s10 = int_to_ptr.vmem [resolvable:$true] %s16_s10 }
   0x3   :  { %s199_s11 = scalar_lea.vmem %s17_s10, 1024  ;;  %p204_p1 = scmp.lt.s32.totalorder %s17_s10, %s17_s10 }
   0x4   :  { %p200_p0 = scmp.ne.s32.totalorder %s17_s10, %s199_s11  ;;  %p205_p2 = scmp.lt.s32.totalorder %s199_s11, %s199_s11 }
   0x6   :  { %p206_p3 = por %p205_p2, %p204_p1 }
   0x8   :  { %p207_p4 = pnand %p206_p3, %p200_p0 }
   0xa   :  { %210 = shalt.err (!%p207_p4)
}
   0xb   :  { %s236_s12 = smov 128   ;;  %s237_s13 = smov 8  }
   0xc   :  { %22 = dma.hbm_to_vmem [thread:$0]  %s275_s1, 1024, %s17_s10, [#allocation3], %s236_s12, %s236_s12, %s237_s13  }
   0xd   :  { %231 = dma.done.wait [#allocation3], 1024  }
   0xe   :  { %232 = vsyncadd [#allocation3], 4294966272  ;;  %v238_v0 = vmov 0   ;;  %v26_v1 = vld [vmem:[%s274_s0] sm:$0xff]  ;;  %v49_v2 = vld [vmem:[#allocation2 + $0x38] sm:$0xff]  ;;  %v28_v11 = vlaneseq  ;;  %vm50_vm0 = vcmask 523264  }
   0xf   :  { %190 = vset.pattern.permute.xlu0 %v238_v0  ;;  %165 = vmatprep.subr.mxu0 %v49_v2  ;;  %v48_v3 = vld [vmem:[#allocation2 + $0x30] sm:$0xff]  ;;  %v27_v4 = vld [vmem:[%s274_s0 + $0x8] sm:$0xff]  ;;  %v46_v6 = vld [vmem:[#allocation2 + $0x20] sm:$0xff]  ;;  %v239_v14 = vmov 0.0   ;;  %s240_s0 = smov [#allocation5]  }
  0x10   :  { %31 = vperm.xlu0 %190, %v26_v1   ;;  %166 = vmatpush3.msra.mxu0 %v49_v2  ;;  %v47_v5 = vld [vmem:[#allocation2 + $0x28] sm:$0xff]  ;;  %v45_v7 = vld [vmem:[#allocation2 + $0x18] sm:$0xff]  ;;  %v44_v8 = vld [vmem:[#allocation2 + $0x10] sm:$0xff]  ;;  %v29_v12 = vand.u32 127, %v28_v11  ;;  %s139_s1 = sshll.u32 %s240_s0, 4  ;;  %s140_s1 = int_to_ptr.vmem [resolvable:$true] %s139_s1 }
  0x11   :  { %167 = vmatprep.subr.mxu0 %v48_v3  ;;  %v43_v9 = vld [vmem:[#allocation2 + $0x8] sm:$0xff]  ;;  %v42_v10 = vld [vmem:[#allocation2] sm:$0xff]  ;;  %s211_s20 = scalar_lea.vmem %s140_s1, 256  ;;  %p216_p6 = scmp.lt.s32.totalorder %s140_s1, %s140_s1 }
  0x12   :  { %168 = vmatpush3.msra.mxu0 %v48_v3  ;;  %p212_p5 = scmp.ne.s32.totalorder %s140_s1, %s211_s20  ;;  %p217_p7 = scmp.lt.s32.totalorder %s211_s20, %s211_s20 }
  0x13   :  { %169 = vmatprep.subr.mxu0 %v47_v5 }
  0x14   :  { %34 = vperm.xlu0 %190, %v27_v4   ;;  %170 = vmatpush3.msra.mxu0 %v47_v5  ;;  %p218_p8 = por %p217_p7, %p216_p6 }
  0x15   :  { %171 = vmatprep.subr.mxu0 %v46_v6 }
  0x16   :  { %172 = vmatpush3.msra.mxu0 %v46_v6  ;;  %p219_p9 = pnand %p218_p8, %p212_p5 }
  0x17   :  { %173 = vmatprep.subr.mxu0 %v45_v7 }
  0x18   :  { %174 = vmatpush3.msra.mxu0 %v45_v7 }
  0x19   :  { %175 = vmatprep.subr.mxu0 %v44_v8 }
  0x1a   :  { %176 = vmatpush3.msra.mxu0 %v44_v8 }
  0x1b   :  { %177 = vmatprep.subr.mxu0 %v43_v9 }
  0x1c   :  { %178 = vmatpush3.msra.mxu0 %v43_v9 }
  0x1d   :  { %179 = vmatprep.subr.mxu0 %v42_v10 }
  0x1e   :  { %180 = vmatpush3.msra.mxu0 %v42_v10 }
  0x8b   :  { %v32_v13 = vpop.permute.xlu0 %31 }
  0x8c   :  { %vm36_vm1 = vcmp.eq.s32.totalorder %v29_v12, %v32_v13 }
  0x8d   :  { %v151_v15 = vsel %vm36_vm1, 1.0, %v239_v14 }
  0x8e   :  { %181 = vmatprep.mubr.msk.f32.mxu0 %vm50_vm0, %v151_v15 }
  0x8f   :  { %v35_v16 = vpop.permute.xlu0 %34 }
  0x90   :  { %vm37_vm2 = vcmp.eq.s32.totalorder %v29_v12, %v35_v16 }
  0x91   :  { %v152_v17 = vsel %vm37_vm2, 1.0, %v239_v14 }
  0x92   :  { %182 = vmatmul.mubr.msk.f32.vlgmr.msra.gmra.mxu0 %vm50_vm0, %v152_v17 }
 0x152   :  { %v183_v18 = vpop.f32.mrf.mxu0 }
 0x153   :  { %133 = vst [vmem:[#allocation5 + $0x8] sm:$0xff] %v183_v18 }
 0x154   :  { %v123_v19 = vpop.f32.mrf.mxu0 }
 0x155   :  { %132 = vst [vmem:[#allocation5] sm:$0xff] %v123_v19 }
 0x156   :  { %222 = shalt.err (!%p219_p9)
}
 0x157   :  { %145 = dma.vmem_to_hbm [thread:$0]  %s140_s1, 256, %s276_s2, [#allocation4], %s236_s12, %s236_s12, %s237_s13  }
 0x158   :  { %233 = dma.done.wait [#allocation4], 256  }
 0x159   :  { %234 = vsyncadd [#allocation4], 4294967040 }
 0x15a   :  { %149 = vsyncpa [#allocation3], 1 }
 0x15b   :  { %150 = vsyncpa [#allocation4], 1 }

</bundles_post_ra>
